<compile_context>
chip_gen: v7x
topology: tpu7x:2x2x1
jax: 0.10.0
libtpu: 0.0.40
codegen_flags: <defaults>
</compile_context>

<pallas_src>
import functools

import jax
import jax.numpy as jnp
from jax.experimental import pallas as pl
from jax.experimental.pallas import tpu as pltpu

VARIABLE_NUM = 8   # "variable_num" is undefined in the original script; chosen small.
HIDDEN = 100       # logical hidden size of the PyTorch module
PAD = 128          # lane-aligned padded feature / hidden size
MAX_TM = 512       # max rows (stacked ODE states) per grid step


def _round_up(x, m):
    return ((x + m - 1) // m) * m


def _row_tiling(rows):
    """Row-tile size and grid length for `rows` stacked solver states."""
    tm = min(MAX_TM, _round_up(max(rows, 1), 128))
    grid = _round_up(rows, tm) // tm
    return tm, grid


# ---------------------------------------------------------------------------
# Kernels
# ---------------------------------------------------------------------------

def _mlp(h, w_ref, b_ref):
    """Padded 4-layer MLP: bf16 operands, f32 accumulation, f32 bias + ReLU."""
    h = h.astype(jnp.bfloat16)
    for layer in range(3):
        h = jnp.dot(h, w_ref[layer], preferred_element_type=jnp.float32) + b_ref[layer]
        h = jnp.maximum(h, 0.0).astype(jnp.bfloat16)
    return jnp.dot(h, w_ref[3], preferred_element_type=jnp.float32) + b_ref[3]


def _odefunc_kernel(y_ref, w_ref, b_ref, out_ref):
    # y_ref: (TM, PAD) bf16; w_ref: (4, PAD, PAD) bf16; b_ref: (4, 1, PAD) f32.
    out_ref[...] = _mlp(y_ref[...], w_ref, b_ref).astype(out_ref.dtype)


def _euler_kernel(y0_ref, w_ref, b_ref, y_ref, *, dt):
    # grid = (row_tiles, steps).  y_ref (the output block) has a constant block
    # index along the step axis, so the state stays resident in VMEM and the
    # whole integration of a row tile runs with a single weight DMA.
    step = pl.program_id(1)

    @pl.when(step == 0)
    def _():
        y_ref[...] = y0_ref[...]

    y = y_ref[...]                       # f32 state kept in VMEM
    f = _mlp(y, w_ref, b_ref)            # one RHS evaluation
    y_ref[...] = y + dt * f


# ---------------------------------------------------------------------------
# Wrappers
# ---------------------------------------------------------------------------

def _pallas_net(y_padded, w, b, *, tm, grid):
    assert y_padded.shape == (tm * grid, PAD)
    row_spec = pl.BlockSpec((tm, PAD), lambda i: (i, 0))
    w_spec = pl.BlockSpec((4, PAD, PAD), lambda i: (0, 0, 0))   # constant -> resident
    b_spec = pl.BlockSpec((4, 1, PAD), lambda i: (0, 0, 0))
    return pl.pallas_call(
        _odefunc_kernel,
        out_shape=jax.ShapeDtypeStruct((tm * grid, PAD), jnp.bfloat16),
        grid=(grid,),
        in_specs=[row_spec, w_spec, b_spec],
        out_specs=row_spec,
        compiler_params=pltpu.CompilerParams(
            dimension_semantics=("parallel",)),
    )(y_padded, w, b)


@jax.jit
def odefunc_forward(t, y, params):
    """Drop-in forward: (rows, variable_num) f32 -> (rows, variable_num) f32.

    `t` is ignored (matches the PyTorch module).  pad + kernel + slice are fused
    under this single jit.
    """
    del t
    w, b = params
    rows, var = y.shape
    tm, grid = _row_tiling(rows)
    m_pad = tm * grid
    y_p = jnp.zeros((m_pad, PAD), jnp.bfloat16).at[:rows, :var].set(
        y.astype(jnp.bfloat16))
    out = _pallas_net(y_p, w, b, tm=tm, grid=grid)
    return out[:rows, :var].astype(jnp.float32)


@jax.jit
def odefunc_forward_padded(t, y_padded, params):
    """Forward for solvers that keep their state persistently in the padded
    (rows_pad, 128) layout: no per-call pad / unpad / extra HBM round trips."""
    del t
    w, b = params
    m_pad, pad = y_padded.shape
    assert pad == PAD and m_pad % 128 == 0
    tm = 128
    for cand in (MAX_TM, 256, 128):
        if m_pad % cand == 0:
            tm = cand
            break
    grid = m_pad // tm
    return _pallas_net(y_padded.astype(jnp.bfloat16), w, b, tm=tm, grid=grid)


@functools.partial(jax.jit, static_argnames=("dt", "num_steps"))
def euler_integrate(y0, params, *, dt, num_steps):
    """Explicit Euler with ALL `num_steps` RHS evaluations fused into ONE
    pallas_call: weights and state stay VMEM-resident for the whole run."""
    w, b = params
    rows, var = y0.shape
    tm, grid = _row_tiling(rows)
    m_pad = tm * grid
    y_p = jnp.zeros((m_pad, PAD), jnp.float32).at[:rows, :var].set(
        y0.astype(jnp.float32))

    row_spec = pl.BlockSpec((tm, PAD), lambda i, s: (i, 0))
    w_spec = pl.BlockSpec((4, PAD, PAD), lambda i, s: (0, 0, 0))
    b_spec = pl.BlockSpec((4, 1, PAD), lambda i, s: (0, 0, 0))

    out = pl.pallas_call(
        functools.partial(_euler_kernel, dt=float(dt)),
        out_shape=jax.ShapeDtypeStruct((m_pad, PAD), jnp.float32),
        grid=(grid, num_steps),
        in_specs=[row_spec, w_spec, b_spec],
        out_specs=row_spec,                 # constant over steps -> resident state
        compiler_params=pltpu.CompilerParams(
            dimension_semantics=("parallel", "arbitrary")),
    )(y_p, w, b)
    return out[:rows, :var]


# ---------------------------------------------------------------------------
# Parameters & references
# ---------------------------------------------------------------------------

def init_params(key, variable_num=VARIABLE_NUM, hidden=HIDDEN):
    """nn.init.normal_(weight, std=0.1) / zero bias, packed and zero-padded to 128.

    Padded rows/cols of every weight/bias are exactly zero, so the padded
    computation equals the unpadded one.
    """
    dims = [(variable_num, hidden), (hidden, hidden),
            (hidden, hidden), (hidden, variable_num)]
    w = jnp.zeros((4, PAD, PAD), jnp.float32)
    for i, (fin, fout) in enumerate(dims):
        k = jax.random.fold_in(key, i)
        w = w.at[i, :fin, :fout].set(
            0.1 * jax.random.normal(k, (fin, fout), dtype=jnp.float32))
    b = jnp.zeros((4, 1, PAD), jnp.float32)
    return w.astype(jnp.bfloat16), b


def pack_params(weights, biases):
    """Pack 4 (fin, fout) weights / (fout,) biases (e.g. a trained checkpoint,
    already in x @ W layout) into the padded kernel layout.  The pad region is
    written over zeros AFTER the bf16 cast, so it is exactly zero."""
    w = jnp.zeros((4, PAD, PAD), jnp.bfloat16)
    b = jnp.zeros((4, 1, PAD), jnp.float32)
    for i, (wi, bi) in enumerate(zip(weights, biases)):
        fin, fout = wi.shape
        w = w.at[i, :fin, :fout].set(
            jnp.asarray(wi, jnp.float32).astype(jnp.bfloat16))
        b = b.at[i, 0, :fout].set(jnp.asarray(bi, jnp.float32))
    return w, b


def odefunc_reference(t, y, params):
    """Plain-JAX reference with the same bf16-operand / f32-accumulate math."""
    del t
    w, b = params
    rows, var = y.shape
    h = jnp.zeros((rows, PAD), jnp.bfloat16).at[:, :var].set(y.astype(jnp.bfloat16))
    for layer in range(3):
        h = jnp.dot(h, w[layer], preferred_element_type=jnp.float32) + b[layer]
        h = jnp.maximum(h, 0.0).astype(jnp.bfloat16)
    h = jnp.dot(h, w[3], preferred_element_type=jnp.float32) + b[3]
    return h[:, :var]


def euler_reference(y0, params, *, dt, num_steps):
    y = y0.astype(jnp.float32)
    for _ in range(num_steps):
        y = y + dt * odefunc_reference(None, y, params)
    return y


# ---------------------------------------------------------------------------
# Demo / self-check
# ---------------------------------------------------------------------------

if __name__ == "__main__":
    key = jax.random.PRNGKey(0)
    params = init_params(key)
    t = jnp.float32(0.0)   # unused, as in the PyTorch module

    # 1) Single small RHS evaluation (typical per-solver-step call shape).
    y_small = jax.random.normal(jax.random.fold_in(key, 100),
                                (8, VARIABLE_NUM), dtype=jnp.float32)
    out_small = jax.block_until_ready(odefunc_forward(t, y_small, params))
    assert out_small.shape == y_small.shape
    ref_small = odefunc_reference(t, y_small, params)
    assert jnp.allclose(out_small, ref_small, atol=1e-2, rtol=1e-2)

    # 2) Stacked solver states: 1024 rows -> TM=512, grid=2 (amortizes per-step
    #    overhead; on v7x the two row tiles can split across the TensorCores).
    y_stack = jax.random.normal(jax.random.fold_in(key, 200),
                                (1024, VARIABLE_NUM), dtype=jnp.float32)
    out_stack = jax.block_until_ready(odefunc_forward(t, y_stack, params))
    assert out_stack.shape == y_stack.shape
    ref_stack = odefunc_reference(t, y_stack, params)
    assert jnp.allclose(out_stack, ref_stack, atol=1e-2, rtol=1e-2)

    # 3) Persistent padded-state path: no per-call pad / unpad.
    tm0, grid0 = _row_tiling(y_small.shape[0])
    y_pad = jnp.zeros((tm0 * grid0, PAD), jnp.bfloat16).at[
        :y_small.shape[0], :VARIABLE_NUM].set(y_small.astype(jnp.bfloat16))
    out_pad = jax.block_until_ready(odefunc_forward_padded(t, y_pad, params))
    assert out_pad.shape == y_pad.shape
    assert jnp.allclose(out_pad[:8, :VARIABLE_NUM].astype(jnp.float32),
                        ref_small, atol=2e-2, rtol=2e-2)

    # 4) Fused Euler integration: 16 RHS evaluations in ONE pallas_call.
    y_int = jax.block_until_ready(
        euler_integrate(y_small, params, dt=0.05, num_steps=16))
    ref_int = euler_reference(y_small, params, dt=0.05, num_steps=16)
    assert y_int.shape == y_small.shape
    assert jnp.allclose(y_int, ref_int, atol=2e-2, rtol=2e-2)

    print("KERNEL_OK")
</pallas_src>

<mosaic_0001>
module attributes {stable_mosaic.version = 11 : i64} {
  func.func @_odefunc_kernel(%arg0: i32, %arg1: memref<128x128xbf16, #tpu.memory_space<vmem>>, %arg2: memref<4x128x128xbf16, #tpu.memory_space<vmem>>, %arg3: memref<4x1x128xf32, #tpu.memory_space<vmem>>, %arg4: memref<128x128xbf16, #tpu.memory_space<vmem>>) attributes {dimension_semantics = [#tpu.dimension_semantics<parallel>], iteration_bounds = array<i64: 1>, scalar_prefetch = 0 : i64, scratch_operands = 0 : i64, tpu.core_type = #tpu.core_type<tc>, window_params = [{transform_indices = @transform_0, window_bounds = array<i64: 128, 128>}, {pipeline_mode = #tpu.pipeline_mode<synchronous>, transform_indices = @transform_1, window_bounds = array<i64: 4, 128, 128>}, {pipeline_mode = #tpu.pipeline_mode<synchronous>, transform_indices = @transform_2, window_bounds = array<i64: 4, 1, 128>}, {transform_indices = @transform_3, window_bounds = array<i64: 128, 128>}]} {
    %c0 = arith.constant 0 : index
    %c0_0 = arith.constant 0 : index
    %0 = vector.load %arg1[%c0, %c0_0] : memref<128x128xbf16, #tpu.memory_space<vmem>>, vector<128x128xbf16>
    %c0_1 = arith.constant 0 : index
    %c0_2 = arith.constant 0 : index
    %c0_3 = arith.constant 0 : index
    %1 = vector.load %arg2[%c0_1, %c0_2, %c0_3] : memref<4x128x128xbf16, #tpu.memory_space<vmem>>, vector<1x128x128xbf16>
    %2 = vector.shape_cast %1 : vector<1x128x128xbf16> to vector<128x128xbf16>
    %cst = arith.constant dense<0.000000e+00> : vector<128x128xf32>
    %3 = tpu.matmul %0, %2, %cst {dimension_numbers = #tpu.dot_dimension_numbers<[1], [0], [0], [1], [0, 0, 1, 1], [], []>} : vector<128x128xbf16>, vector<128x128xbf16>, vector<128x128xf32> -> vector<128x128xf32>
    %c0_4 = arith.constant 0 : index
    %c0_5 = arith.constant 0 : index
    %c0_6 = arith.constant 0 : index
    %4 = vector.load %arg3[%c0_4, %c0_5, %c0_6] : memref<4x1x128xf32, #tpu.memory_space<vmem>>, vector<1x1x128xf32>
    %5 = vector.shape_cast %4 : vector<1x1x128xf32> to vector<1x128xf32>
    %6 = vector.broadcast %5 : vector<1x128xf32> to vector<128x128xf32>
    %7 = arith.addf %3, %6 : vector<128x128xf32>
    %cst_7 = arith.constant 0.000000e+00 : f32
    %8 = vector.broadcast %cst_7 : f32 to vector<128x128xf32>
    %9 = arith.maximumf %7, %8 : vector<128x128xf32>
    %10 = arith.truncf %9 : vector<128x128xf32> to vector<128x128xbf16>
    %c1 = arith.constant 1 : index
    %c0_8 = arith.constant 0 : index
    %c0_9 = arith.constant 0 : index
    %11 = vector.load %arg2[%c1, %c0_8, %c0_9] : memref<4x128x128xbf16, #tpu.memory_space<vmem>>, vector<1x128x128xbf16>
    %12 = vector.shape_cast %11 : vector<1x128x128xbf16> to vector<128x128xbf16>
    %cst_10 = arith.constant dense<0.000000e+00> : vector<128x128xf32>
    %13 = tpu.matmul %10, %12, %cst_10 {dimension_numbers = #tpu.dot_dimension_numbers<[1], [0], [0], [1], [0, 0, 1, 1], [], []>} : vector<128x128xbf16>, vector<128x128xbf16>, vector<128x128xf32> -> vector<128x128xf32>
    %c1_11 = arith.constant 1 : index
    %c0_12 = arith.constant 0 : index
    %c0_13 = arith.constant 0 : index
    %14 = vector.load %arg3[%c1_11, %c0_12, %c0_13] : memref<4x1x128xf32, #tpu.memory_space<vmem>>, vector<1x1x128xf32>
    %15 = vector.shape_cast %14 : vector<1x1x128xf32> to vector<1x128xf32>
    %16 = vector.broadcast %15 : vector<1x128xf32> to vector<128x128xf32>
    %17 = arith.addf %13, %16 : vector<128x128xf32>
    %cst_14 = arith.constant 0.000000e+00 : f32
    %18 = vector.broadcast %cst_14 : f32 to vector<128x128xf32>
    %19 = arith.maximumf %17, %18 : vector<128x128xf32>
    %20 = arith.truncf %19 : vector<128x128xf32> to vector<128x128xbf16>
    %c2 = arith.constant 2 : index
    %c0_15 = arith.constant 0 : index
    %c0_16 = arith.constant 0 : index
    %21 = vector.load %arg2[%c2, %c0_15, %c0_16] : memref<4x128x128xbf16, #tpu.memory_space<vmem>>, vector<1x128x128xbf16>
    %22 = vector.shape_cast %21 : vector<1x128x128xbf16> to vector<128x128xbf16>
    %cst_17 = arith.constant dense<0.000000e+00> : vector<128x128xf32>
    %23 = tpu.matmul %20, %22, %cst_17 {dimension_numbers = #tpu.dot_dimension_numbers<[1], [0], [0], [1], [0, 0, 1, 1], [], []>} : vector<128x128xbf16>, vector<128x128xbf16>, vector<128x128xf32> -> vector<128x128xf32>
    %c2_18 = arith.constant 2 : index
    %c0_19 = arith.constant 0 : index
    %c0_20 = arith.constant 0 : index
    %24 = vector.load %arg3[%c2_18, %c0_19, %c0_20] : memref<4x1x128xf32, #tpu.memory_space<vmem>>, vector<1x1x128xf32>
    %25 = vector.shape_cast %24 : vector<1x1x128xf32> to vector<1x128xf32>
    %26 = vector.broadcast %25 : vector<1x128xf32> to vector<128x128xf32>
    %27 = arith.addf %23, %26 : vector<128x128xf32>
    %cst_21 = arith.constant 0.000000e+00 : f32
    %28 = vector.broadcast %cst_21 : f32 to vector<128x128xf32>
    %29 = arith.maximumf %27, %28 : vector<128x128xf32>
    %30 = arith.truncf %29 : vector<128x128xf32> to vector<128x128xbf16>
    %c3 = arith.constant 3 : index
    %c0_22 = arith.constant 0 : index
    %c0_23 = arith.constant 0 : index
    %31 = vector.load %arg2[%c3, %c0_22, %c0_23] : memref<4x128x128xbf16, #tpu.memory_space<vmem>>, vector<1x128x128xbf16>
    %32 = vector.shape_cast %31 : vector<1x128x128xbf16> to vector<128x128xbf16>
    %cst_24 = arith.constant dense<0.000000e+00> : vector<128x128xf32>
    %33 = tpu.matmul %30, %32, %cst_24 {dimension_numbers = #tpu.dot_dimension_numbers<[1], [0], [0], [1], [0, 0, 1, 1], [], []>} : vector<128x128xbf16>, vector<128x128xbf16>, vector<128x128xf32> -> vector<128x128xf32>
    %c3_25 = arith.constant 3 : index
    %c0_26 = arith.constant 0 : index
    %c0_27 = arith.constant 0 : index
    %34 = vector.load %arg3[%c3_25, %c0_26, %c0_27] : memref<4x1x128xf32, #tpu.memory_space<vmem>>, vector<1x1x128xf32>
    %35 = vector.shape_cast %34 : vector<1x1x128xf32> to vector<1x128xf32>
    %36 = vector.broadcast %35 : vector<1x128xf32> to vector<128x128xf32>
    %37 = arith.addf %33, %36 : vector<128x128xf32>
    %38 = arith.truncf %37 : vector<128x128xf32> to vector<128x128xbf16>
    %c0_28 = arith.constant 0 : index
    %c0_29 = arith.constant 0 : index
    %39 = vector.load %arg4[%c0_28, %c0_29] : memref<128x128xbf16, #tpu.memory_space<vmem>>, vector<128x128xbf16>
    tpu.vector_store %arg4[%c0_28, %c0_29], %38 {strides = array<i32>} : memref<128x128xbf16, #tpu.memory_space<vmem>>, vector<128x128xbf16>,
    return
  }
  func.func @transform_0(%arg0: i32) -> (i32, i32) {
    %c0_i32 = arith.constant 0 : i32
    %c0_i32_0 = arith.constant 0 : i32
    return %arg0, %c0_i32 : i32, i32
  }
  func.func @transform_1(%arg0: i32) -> (i32, i32, i32) {
    %c0_i32 = arith.constant 0 : i32
    %c0_i32_0 = arith.constant 0 : i32
    %c0_i32_1 = arith.constant 0 : i32
    %c0_i32_2 = arith.constant 0 : i32
    return %c0_i32, %c0_i32_0, %c0_i32_1 : i32, i32, i32
  }
  func.func @transform_2(%arg0: i32) -> (i32, i32, i32) {
    %c0_i32 = arith.constant 0 : i32
    %c0_i32_0 = arith.constant 0 : i32
    %c0_i32_1 = arith.constant 0 : i32
    %c0_i32_2 = arith.constant 0 : i32
    return %c0_i32, %c0_i32_0, %c0_i32_1 : i32, i32, i32
  }
  func.func @transform_3(%arg0: i32) -> (i32, i32) {
    %c0_i32 = arith.constant 0 : i32
    %c0_i32_0 = arith.constant 0 : i32
    return %arg0, %c0_i32 : i32, i32
  }
}

</mosaic_0001>

<bundles_post_ra>
// kernel: odefunc_forward.1
= control target key start
LH: loop header
LB: loop body
LE: loop exit
PB: predicated region body
PF: predicated region fallthrough
CT: control target
= control target key end

     0   :  { %8 = vsyncpa [#allocation3], 0  ;;  %s1313_s12 = smov [#allocation2]   ;;  %s1408_s0 = inlined_call_operand.vmem [shape: bf16[128,128], index: 0, kind: input, shape index: {}]   ;;  %s1409_s1 = inlined_call_operand.hbm [shape: bf16[4,128,128], index: 1, kind: input, shape index: {}]   ;;  %s1410_s2 = inlined_call_operand.vmem [shape: f32[4,1,128], index: 2, kind: input, shape index: {}]   ;;  %s1411_s3 = inlined_call_operand.vmem [shape: bf16[128,128], index: 3, kind: output, shape index: {}]  }
   0x1   :  { %s16_s13 = sshll.u32 %s1313_s12, 4  ;;  %s1289_s16 = scalar_lea.hbm %s1409_s1, 4096  ;;  %s17_s13 = int_to_ptr.vmem [resolvable:$true] %s16_s13 }
   0x2   :  { %p1290_p0 = scmp.ne.s32.totalorder %s1409_s1, %s1289_s16  ;;  %p1293_p1 = scmp.lt.u32.totalorder %s1289_s16, %s1409_s1 }
   0x4   :  { %p1295_p2 = pnand %p1293_p1, %p1290_p0 }
   0x6   :  { %1298 = shalt.err (!%p1295_p2)
}
   0x7   :  { %s1299_s21 = scalar_lea.vmem %s17_s13, 4096  ;;  %p1304_p4 = scmp.lt.s32.totalorder %s17_s13, %s17_s13 }
   0x8   :  { %p1300_p3 = scmp.ne.s32.totalorder %s17_s13, %s1299_s21  ;;  %p1305_p5 = scmp.lt.s32.totalorder %s1299_s21, %s1299_s21 }
   0xa   :  { %p1306_p6 = por %p1305_p5, %p1304_p4 }
   0xc   :  { %p1307_p7 = pnand %p1306_p6, %p1300_p3 }
   0xe   :  { %1310 = shalt.err (!%p1307_p7)
}
   0xf   :  { %s1314_s22 = smov 64   ;;  %s1315_s23 = smov 4  }
  0x10   :  { %22 = dma.hbm_to_vmem [thread:$0]  %s1409_s1, 4096, %s17_s13, [#allocation3], %s1314_s22, %s1314_s22, %s1315_s23  }
  0x11   :  { %1311 = dma.done.wait [#allocation3], 4096  }
  0x12   :  { %1312 = vsyncadd [#allocation3], 4294963200  ;;  %v1249_v0 = vld [vmem:[#allocation2] sm:$0xff]   ;;  %v1250_v1 = vld [vmem:[#allocation2 + $0x8] sm:$0xff]  }
  0x13   :  { %1118 = vmatprep.subr.bf16.mxu0 %v1249_v0  ;;  %v1251_v2 = vld [vmem:[#allocation2 + $0x10] sm:$0xff]   ;;  %v1252_v3 = vld [vmem:[#allocation2 + $0x18] sm:$0xff]   ;;  %v1257_v4 = vld [vmem:[%s1408_s0] sm:$0xff]  }
  0x14   :  { %1119 = vmatpush3.bf16.msra.mxu0 %v1249_v0  ;;  %1134 = vmatprep.mubr.bf16.mxu0 %v1257_v4  ;;  %v1253_v5 = vld [vmem:[#allocation2 + $0x20] sm:$0xff]   ;;  %v1254_v6 = vld [vmem:[#allocation2 + $0x28] sm:$0xff]   ;;  %v1255_v9 = vld [vmem:[#allocation2 + $0x30] sm:$0xff]  }
  0x15   :  { %1120 = vmatprep.subr.bf16.mxu0 %v1250_v1  ;;  %v1265_v7 = vld [vmem:[#allocation2 + $0x40] sm:$0xff]   ;;  %v1266_v8 = vld [vmem:[#allocation2 + $0x48] sm:$0xff]   ;;  %v1267_v10 = vld [vmem:[#allocation2 + $0x50] sm:$0xff]  }
  0x16   :  { %1150 = vmatprep.subr.bf16.mxu1 %v1265_v7  ;;  %v1256_v11 = vld [vmem:[#allocation2 + $0x38] sm:$0xff]   ;;  %v1269_v13 = vld [vmem:[#allocation2 + $0x60] sm:$0xff]   ;;  %v1258_v14 = vld [vmem:[%s1408_s0 + $0x8] sm:$0xff]  }
  0x17   :  { %1151 = vmatpush3.bf16.msra.mxu1 %v1265_v7  ;;  %v1268_v12 = vld [vmem:[#allocation2 + $0x58] sm:$0xff]   ;;  %v1259_v15 = vld [vmem:[%s1408_s0 + $0x10] sm:$0xff]   ;;  %v1270_v16 = vld [vmem:[#allocation2 + $0x68] sm:$0xff]  }
  0x18   :  { %1121 = vmatpush3.bf16.msra.mxu0 %v1250_v1  ;;  %1152 = vmatprep.subr.bf16.mxu1 %v1266_v8  ;;  %v1260_v17 = vld [vmem:[%s1408_s0 + $0x18] sm:$0xff]   ;;  %v1261_v18 = vld [vmem:[%s1408_s0 + $0x20] sm:$0xff]   ;;  %v1262_v19 = vld [vmem:[%s1408_s0 + $0x28] sm:$0xff]  }
  0x19   :  { %1122 = vmatprep.subr.bf16.mxu0 %v1251_v2  ;;  %v1263_v20 = vld [vmem:[%s1408_s0 + $0x30] sm:$0xff]   ;;  %v1264_v21 = vld [vmem:[%s1408_s0 + $0x38] sm:$0xff]   ;;  %v1273_v24 = vld [vmem:[#allocation2 + $0x80] sm:$0xff]  }
  0x1a   :  { %v1271_v22 = vld [vmem:[#allocation2 + $0x70] sm:$0xff]   ;;  %v1272_v23 = vld [vmem:[#allocation2 + $0x78] sm:$0xff]   ;;  %v1274_v25 = vld [vmem:[#allocation2 + $0x88] sm:$0xff]  }
  0x1b   :  { %1153 = vmatpush3.bf16.msra.mxu1 %v1266_v8  ;;  %v1275_v26 = vld [vmem:[#allocation2 + $0x90] sm:$0xff]   ;;  %v1276_v27 = vld [vmem:[#allocation2 + $0x98] sm:$0xff]   ;;  %v1277_v28 = vld [vmem:[#allocation2 + $0xa0] sm:$0xff]  }
  0x1c   :  { %1123 = vmatpush3.bf16.msra.mxu0 %v1251_v2  ;;  %1154 = vmatprep.subr.bf16.mxu1 %v1267_v10  ;;  %v1278_v29 = vld [vmem:[#allocation2 + $0xa8] sm:$0xff]   ;;  %v928_v30 = vld [vmem:[%s1410_s2] ss:$0 sm:$0xff] }
  0x1d   :  { %1124 = vmatprep.subr.bf16.mxu0 %v1252_v3 }
  0x1f   :  { %1155 = vmatpush3.bf16.msra.mxu1 %v1267_v10 }
  0x20   :  { %1125 = vmatpush3.bf16.msra.mxu0 %v1252_v3  ;;  %1156 = vmatprep.subr.bf16.mxu1 %v1268_v12 }
  0x21   :  { %1126 = vmatprep.subr.bf16.mxu0 %v1253_v5 }
  0x23   :  { %1157 = vmatpush3.bf16.msra.mxu1 %v1268_v12 }
  0x24   :  { %1127 = vmatpush3.bf16.msra.mxu0 %v1253_v5  ;;  %1158 = vmatprep.subr.bf16.mxu1 %v1269_v13 }
  0x25   :  { %1128 = vmatprep.subr.bf16.mxu0 %v1254_v6 }
  0x27   :  { %1159 = vmatpush3.bf16.msra.mxu1 %v1269_v13 }
  0x28   :  { %1129 = vmatpush3.bf16.msra.mxu0 %v1254_v6  ;;  %1160 = vmatprep.subr.bf16.mxu1 %v1270_v16 }
  0x29   :  { %1130 = vmatprep.subr.bf16.mxu0 %v1255_v9 }
  0x2b   :  { %1161 = vmatpush3.bf16.msra.mxu1 %v1270_v16 }
  0x2c   :  { %1131 = vmatpush3.bf16.msra.mxu0 %v1255_v9  ;;  %1162 = vmatprep.subr.bf16.mxu1 %v1271_v22 }
  0x2d   :  { %1132 = vmatprep.subr.bf16.mxu0 %v1256_v11 }
  0x2f   :  { %1163 = vmatpush3.bf16.msra.mxu1 %v1271_v22 }
  0x30   :  { %1133 = vmatpush3.bf16.msra.mxu0 %v1256_v11  ;;  %1164 = vmatprep.subr.bf16.mxu1 %v1272_v23 }
  0x31   :  { %1182 = vmatprep.subr.bf16.mxu0 %v1273_v24 }
  0x33   :  { %1135 = vmatmul.mubr.bf16.vlgmr.msra.gmra.mrb[0].mxu0 %v1258_v14  ;;  %1165 = vmatpush3.bf16.msra.mxu1 %v1272_v23  ;;  %v1279_v23 = vld [vmem:[#allocation2 + $0xb0] sm:$0xff]  }
  0x34   :  { %1138 = vmatprep.mubr.bf16.mxu0 %v1259_v15  ;;  %1183 = vmatpush3.bf16.msra.mxu0 %v1273_v24  ;;  %v1280_v24 = vld [vmem:[#allocation2 + $0xb8] sm:$0xff]  }
  0x35   :  { %1184 = vmatprep.subr.bf16.mxu0 %v1274_v25 }
  0x38   :  { %1185 = vmatpush3.bf16.msra.mxu0 %v1274_v25  ;;  %v1281_v25 = vld [vmem:[#allocation2 + $0xc0] sm:$0xff]  }
  0x39   :  { %1186 = vmatprep.subr.bf16.mxu0 %v1275_v26  ;;  %1214 = vmatprep.subr.bf16.mxu1 %v1281_v25 }
  0x3b   :  { %1139 = vmatmul.mubr.bf16.gmra.mrb[4].mxu0 %v1260_v17 }
  0x3c   :  { %1142 = vmatprep.mubr.bf16.mxu0 %v1261_v18  ;;  %1187 = vmatpush3.bf16.msra.mxu0 %v1275_v26  ;;  %v1282_v26 = vld [vmem:[#allocation2 + $0xc8] sm:$0xff]  }
  0x3d   :  { %1188 = vmatprep.subr.bf16.mxu0 %v1276_v27 }
  0x40   :  { %1189 = vmatpush3.bf16.msra.mxu0 %v1276_v27  ;;  %v1283_v27 = vld [vmem:[#allocation2 + $0xd0] sm:$0xff]  }
  0x41   :  { %1190 = vmatprep.subr.bf16.mxu0 %v1277_v28 }
  0x43   :  { %1143 = vmatmul.mubr.bf16.gmra.mrb[8].mxu0 %v1262_v19 }
  0x44   :  { %1146 = vmatprep.mubr.bf16.mxu0 %v1263_v20  ;;  %1191 = vmatpush3.bf16.msra.mxu0 %v1277_v28  ;;  %v1284_v28 = vld [vmem:[#allocation2 + $0xd8] sm:$0xff]  }
  0x45   :  { %1192 = vmatprep.subr.bf16.mxu0 %v1278_v29 }
  0x48   :  { %1193 = vmatpush3.bf16.msra.mxu0 %v1278_v29  ;;  %v1285_v29 = vld [vmem:[#allocation2 + $0xe0] sm:$0xff]  }
  0x49   :  { %1194 = vmatprep.subr.bf16.mxu0 %v1279_v23 }
  0x4b   :  { %1147 = vmatmul.mubr.bf16.gmra.mrb[12].mxu0 %v1264_v21 }
  0x4c   :  { %1195 = vmatpush3.bf16.msra.mxu0 %v1279_v23 }
  0x4d   :  { %1196 = vmatprep.subr.bf16.mxu0 %v1280_v24 }
  0x50   :  { %1197 = vmatpush3.bf16.msra.mxu0 %v1280_v24  ;;  %v1287_v24 = vld [vmem:[#allocation2 + $0xf0] sm:$0xff]  }
 0x106   :  { %v1136_v31 = vpop.f32.mrb[0].mxu0 }
 0x107   :  { %v207_v32 = vadd.f32 %v1136_v31, %v928_v30  ;;  %v198_v33 = vpop.f32.mrb[1].mxu0  ;;  %v946_v31 = vld [vmem:[%s1410_s2 + $0x1] ss:$0 sm:$0xff] }
 0x108   :  { %v199_v34 = vadd.f32 %v928_v30, %v198_v33  ;;  %v1137_v35 = vpop.f32.mrb[2].mxu0 }
 0x109   :  { %v210_v36 = vadd.f32 %v1137_v35, %v928_v30  ;;  %v201_v37 = vpop.f32.mrb[3].mxu0  ;;  %v263_v39 = vmax.f32 %v207_v32, 0.0 }
 0x10a   :  { %v202_v38 = vadd.f32 %v928_v30, %v201_v37  ;;  %v261_v41 = vmax.f32 %v199_v34, 0.0 }
 0x10b   :  { %v264_v40 = vmax.f32 %v210_v36, 0.0 }
 0x10c   :  { %v262_v42 = vmax.f32 %v202_v38, 0.0 }
 0x10d   :  { %v278_v43 = vpack.c.bf16 %v264_v40, %v263_v39 }
 0x10e   :  { %v1140_v44 = vpop.f32.mrb[4].mxu0  ;;  %v277_v45 = vpack.c.bf16 %v262_v42, %v261_v41 }
 0x10f   :  { %v223_v46 = vadd.f32 %v1140_v44, %v928_v30  ;;  %v214_v47 = vpop.f32.mrb[5].mxu0 }
 0x110   :  { %v215_v48 = vadd.f32 %v928_v30, %v214_v47  ;;  %v1141_v49 = vpop.f32.mrb[6].mxu0  ;;  %1166 = vmatprep.mubr.bf16.mxu1 %v277_v45 }
 0x111   :  { %v226_v50 = vadd.f32 %v1141_v49, %v928_v30  ;;  %v217_v51 = vpop.f32.mrb[7].mxu0  ;;  %1167 = vmatmul.mubr.bf16.vlgmr.msra.gmra.mrb[0].mxu1 %v278_v43  ;;  %v267_v53 = vmax.f32 %v223_v46, 0.0 }
 0x112   :  { %v218_v52 = vadd.f32 %v928_v30, %v217_v51  ;;  %v265_v55 = vmax.f32 %v215_v48, 0.0  ;;  %1215 = vmatpush3.bf16.msra.mxu1 %v1281_v25  ;;  %v1288_v25 = vld [vmem:[#allocation2 + $0xf8] sm:$0xff]  }
 0x113   :  { %v268_v54 = vmax.f32 %v226_v50, 0.0  ;;  %1216 = vmatprep.subr.bf16.mxu1 %v1282_v26 }
 0x114   :  { %v266_v56 = vmax.f32 %v218_v52, 0.0 }
 0x115   :  { %v280_v57 = vpack.c.bf16 %v268_v54, %v267_v53 }
 0x116   :  { %v279_v58 = vpack.c.bf16 %v266_v56, %v265_v55  ;;  %v1144_v59 = vpop.f32.mrb[8].mxu0  ;;  %1217 = vmatpush3.bf16.msra.mxu1 %v1282_v26  ;;  %v956_v26 = vld [vmem:[%s1410_s2 + $0x2] ss:$0 sm:$0xff] }
 0x117   :  { %v239_v60 = vadd.f32 %v1144_v59, %v928_v30  ;;  %v230_v61 = vpop.f32.mrb[9].mxu0  ;;  %1218 = vmatprep.subr.bf16.mxu1 %v1283_v27 }
 0x118   :  { %v231_v62 = vadd.f32 %v928_v30, %v230_v61  ;;  %v1145_v63 = vpop.f32.mrb[10].mxu0  ;;  %1170 = vmatprep.mubr.bf16.mxu1 %v279_v58 }
 0x119   :  { %v242_v0 = vadd.f32 %v1145_v63, %v928_v30  ;;  %v233_v1 = vpop.f32.mrb[11].mxu0  ;;  %1171 = vmatmul.mubr.bf16.gmra.mrb[4].mxu1 %v280_v57  ;;  %v271_v3 = vmax.f32 %v239_v60, 0.0 }
 0x11a   :  { %v234_v2 = vadd.f32 %v928_v30, %v233_v1  ;;  %v269_v5 = vmax.f32 %v231_v62, 0.0  ;;  %1219 = vmatpush3.bf16.msra.mxu1 %v1283_v27 }
 0x11b   :  { %v272_v4 = vmax.f32 %v242_v0, 0.0  ;;  %1220 = vmatprep.subr.bf16.mxu1 %v1284_v28 }
 0x11c   :  { %v270_v6 = vmax.f32 %v234_v2, 0.0 }
 0x11d   :  { %v282_v7 = vpack.c.bf16 %v272_v4, %v271_v3 }
 0x11e   :  { %v281_v8 = vpack.c.bf16 %v270_v6, %v269_v5  ;;  %v1148_v9 = vpop.f32.mrb[12].mxu0  ;;  %1221 = vmatpush3.bf16.msra.mxu1 %v1284_v28 }
 0x11f   :  { %v255_v10 = vadd.f32 %v1148_v9, %v928_v30  ;;  %v246_v11 = vpop.f32.mrb[13].mxu0  ;;  %1222 = vmatprep.subr.bf16.mxu1 %v1285_v29 }
 0x120   :  { %v247_v12 = vadd.f32 %v928_v30, %v246_v11  ;;  %v1149_v13 = vpop.f32.mrb[14].mxu0  ;;  %1174 = vmatprep.mubr.bf16.mxu1 %v281_v8 }
 0x121   :  { %v258_v14 = vadd.f32 %v1149_v13, %v928_v30  ;;  %v249_v15 = vpop.f32.mrb[15].mxu0  ;;  %1175 = vmatmul.mubr.bf16.gmra.mrb[8].mxu1 %v282_v7  ;;  %v275_v17 = vmax.f32 %v255_v10, 0.0 }
 0x122   :  { %v250_v16 = vadd.f32 %v928_v30, %v249_v15  ;;  %v273_v19 = vmax.f32 %v247_v12, 0.0  ;;  %v1286_v30 = vld [vmem:[#allocation2 + $0xe8] sm:$0xff]   ;;  %1223 = vmatpush3.bf16.msra.mxu1 %v1285_v29 }
 0x123   :  { %v276_v18 = vmax.f32 %v258_v14, 0.0  ;;  %1224 = vmatprep.subr.bf16.mxu1 %v1286_v30 }
 0x124   :  { %v274_v20 = vmax.f32 %v250_v16, 0.0 }
 0x125   :  { %v284_v21 = vpack.c.bf16 %v276_v18, %v275_v17 }
 0x126   :  { %v283_v22 = vpack.c.bf16 %v274_v20, %v273_v19  ;;  %1225 = vmatpush3.bf16.msra.mxu1 %v1286_v30 }
 0x127   :  { %1226 = vmatprep.subr.bf16.mxu1 %v1287_v24 }
 0x128   :  { %1178 = vmatprep.mubr.bf16.mxu1 %v283_v22 }
 0x129   :  { %1179 = vmatmul.mubr.bf16.gmra.mrb[12].mxu1 %v284_v21 }
 0x12a   :  { %1227 = vmatpush3.bf16.msra.mxu1 %v1287_v24 }
 0x12b   :  { %1228 = vmatprep.subr.bf16.mxu1 %v1288_v25 }
 0x12e   :  { %1229 = vmatpush3.bf16.msra.mxu1 %v1288_v25 }
 0x1e4   :  { %v1168_v32 = vpop.f32.mrb[0].mxu1 }
 0x1e5   :  { %v401_v33 = vadd.f32 %v1168_v32, %v946_v31  ;;  %v392_v34 = vpop.f32.mrb[1].mxu1 }
 0x1e6   :  { %v393_v35 = vadd.f32 %v946_v31, %v392_v34  ;;  %v1169_v36 = vpop.f32.mrb[2].mxu1 }
 0x1e7   :  { %v404_v37 = vadd.f32 %v1169_v36, %v946_v31  ;;  %v395_v38 = vpop.f32.mrb[3].mxu1  ;;  %v457_v40 = vmax.f32 %v401_v33, 0.0 }
 0x1e8   :  { %v396_v39 = vadd.f32 %v946_v31, %v395_v38  ;;  %v455_v42 = vmax.f32 %v393_v35, 0.0 }
 0x1e9   :  { %v458_v41 = vmax.f32 %v404_v37, 0.0 }
 0x1ea   :  { %v456_v43 = vmax.f32 %v396_v39, 0.0 }
 0x1eb   :  { %v472_v44 = vpack.c.bf16 %v458_v41, %v457_v40 }
 0x1ec   :  { %v471_v45 = vpack.c.bf16 %v456_v43, %v455_v42  ;;  %v1172_v46 = vpop.f32.mrb[4].mxu1 }
 0x1ed   :  { %v417_v47 = vadd.f32 %v1172_v46, %v946_v31  ;;  %v408_v48 = vpop.f32.mrb[5].mxu1 }
 0x1ee   :  { %v409_v49 = vadd.f32 %v946_v31, %v408_v48  ;;  %v1173_v50 = vpop.f32.mrb[6].mxu1  ;;  %1198 = vmatprep.mubr.bf16.mxu0 %v471_v45 }
 0x1ef   :  { %v420_v51 = vadd.f32 %v1173_v50, %v946_v31  ;;  %v411_v52 = vpop.f32.mrb[7].mxu1  ;;  %1199 = vmatmul.mubr.bf16.vlgmr.msra.gmra.mrb[16].mxu0 %v472_v44  ;;  %v461_v54 = vmax.f32 %v417_v47, 0.0 }
 0x1f0   :  { %v412_v53 = vadd.f32 %v946_v31, %v411_v52  ;;  %v459_v56 = vmax.f32 %v409_v49, 0.0 }
 0x1f1   :  { %v462_v55 = vmax.f32 %v420_v51, 0.0 }
 0x1f2   :  { %v460_v57 = vmax.f32 %v412_v53, 0.0 }
 0x1f3   :  { %v474_v58 = vpack.c.bf16 %v462_v55, %v461_v54 }
 0x1f4   :  { %v473_v59 = vpack.c.bf16 %v460_v57, %v459_v56  ;;  %v1176_v60 = vpop.f32.mrb[8].mxu1 }
 0x1f5   :  { %v433_v61 = vadd.f32 %v1176_v60, %v946_v31  ;;  %v424_v62 = vpop.f32.mrb[9].mxu1 }
 0x1f6   :  { %v425_v63 = vadd.f32 %v946_v31, %v424_v62  ;;  %v1177_v0 = vpop.f32.mrb[10].mxu1  ;;  %1202 = vmatprep.mubr.bf16.mxu0 %v473_v59 }
 0x1f7   :  { %v436_v1 = vadd.f32 %v1177_v0, %v946_v31  ;;  %v427_v2 = vpop.f32.mrb[11].mxu1  ;;  %1203 = vmatmul.mubr.bf16.gmra.mrb[20].mxu0 %v474_v58  ;;  %v465_v4 = vmax.f32 %v433_v61, 0.0 }
 0x1f8   :  { %v428_v3 = vadd.f32 %v946_v31, %v427_v2  ;;  %v463_v6 = vmax.f32 %v425_v63, 0.0 }
 0x1f9   :  { %v466_v5 = vmax.f32 %v436_v1, 0.0 }
 0x1fa   :  { %v464_v7 = vmax.f32 %v428_v3, 0.0 }
 0x1fb   :  { %v476_v8 = vpack.c.bf16 %v466_v5, %v465_v4 }
 0x1fc   :  { %v475_v9 = vpack.c.bf16 %v464_v7, %v463_v6  ;;  %v1180_v10 = vpop.f32.mrb[12].mxu1 }
 0x1fd   :  { %v449_v11 = vadd.f32 %v1180_v10, %v946_v31  ;;  %v440_v12 = vpop.f32.mrb[13].mxu1 }
 0x1fe   :  { %v441_v13 = vadd.f32 %v946_v31, %v440_v12  ;;  %v1181_v14 = vpop.f32.mrb[14].mxu1  ;;  %1206 = vmatprep.mubr.bf16.mxu0 %v475_v9 }
 0x1ff   :  { %v452_v15 = vadd.f32 %v1181_v14, %v946_v31  ;;  %v443_v16 = vpop.f32.mrb[15].mxu1  ;;  %1207 = vmatmul.mubr.bf16.gmra.mrb[24].mxu0 %v476_v8  ;;  %v469_v18 = vmax.f32 %v449_v11, 0.0 }
 0x200   :  { %v444_v17 = vadd.f32 %v946_v31, %v443_v16  ;;  %v467_v20 = vmax.f32 %v441_v13, 0.0 }
 0x201   :  { %v470_v19 = vmax.f32 %v452_v15, 0.0 }
 0x202   :  { %v468_v21 = vmax.f32 %v444_v17, 0.0 }
 0x203   :  { %v478_v22 = vpack.c.bf16 %v470_v19, %v469_v18 }
 0x204   :  { %v477_v23 = vpack.c.bf16 %v468_v21, %v467_v20  ;;  %v966_v20 = vld [vmem:[%s1410_s2 + $0x3] ss:$0 sm:$0xff] }
 0x206   :  { %1210 = vmatprep.mubr.bf16.mxu0 %v477_v23 }
 0x207   :  { %1211 = vmatmul.mubr.bf16.gmra.mrb[28].mxu0 %v478_v22 }
 0x2c2   :  { %v1200_v27 = vpop.f32.mrb[16].mxu0 }
 0x2c3   :  { %v595_v28 = vadd.f32 %v1200_v27, %v956_v26  ;;  %v586_v29 = vpop.f32.mrb[17].mxu0 }
 0x2c4   :  { %v587_v30 = vadd.f32 %v956_v26, %v586_v29  ;;  %v1201_v31 = vpop.f32.mrb[18].mxu0 }
 0x2c5   :  { %v598_v32 = vadd.f32 %v1201_v31, %v956_v26  ;;  %v589_v33 = vpop.f32.mrb[19].mxu0  ;;  %v651_v35 = vmax.f32 %v595_v28, 0.0 }
 0x2c6   :  { %v590_v34 = vadd.f32 %v956_v26, %v589_v33  ;;  %v649_v37 = vmax.f32 %v587_v30, 0.0 }
 0x2c7   :  { %v652_v36 = vmax.f32 %v598_v32, 0.0 }
 0x2c8   :  { %v650_v38 = vmax.f32 %v590_v34, 0.0 }
 0x2c9   :  { %v666_v39 = vpack.c.bf16 %v652_v36, %v651_v35 }
 0x2ca   :  { %v665_v40 = vpack.c.bf16 %v650_v38, %v649_v37  ;;  %v1204_v41 = vpop.f32.mrb[20].mxu0 }
 0x2cb   :  { %v611_v42 = vadd.f32 %v1204_v41, %v956_v26  ;;  %v602_v43 = vpop.f32.mrb[21].mxu0 }
 0x2cc   :  { %v603_v44 = vadd.f32 %v956_v26, %v602_v43  ;;  %v1205_v45 = vpop.f32.mrb[22].mxu0  ;;  %1230 = vmatprep.mubr.bf16.mxu1 %v665_v40 }
 0x2cd   :  { %v614_v46 = vadd.f32 %v1205_v45, %v956_v26  ;;  %v605_v47 = vpop.f32.mrb[23].mxu0  ;;  %1231 = vmatmul.mubr.bf16.vlgmr.msra.gmra.mrb[16].mxu1 %v666_v39  ;;  %v655_v49 = vmax.f32 %v611_v42, 0.0 }
 0x2ce   :  { %v606_v48 = vadd.f32 %v956_v26, %v605_v47  ;;  %v653_v51 = vmax.f32 %v603_v44, 0.0 }
 0x2cf   :  { %v656_v50 = vmax.f32 %v614_v46, 0.0 }
 0x2d0   :  { %v654_v52 = vmax.f32 %v606_v48, 0.0 }
 0x2d1   :  { %v668_v53 = vpack.c.bf16 %v656_v50, %v655_v49 }
 0x2d2   :  { %v667_v54 = vpack.c.bf16 %v654_v52, %v653_v51  ;;  %v1208_v55 = vpop.f32.mrb[24].mxu0 }
 0x2d3   :  { %v627_v56 = vadd.f32 %v1208_v55, %v956_v26  ;;  %v618_v57 = vpop.f32.mrb[25].mxu0 }
 0x2d4   :  { %v619_v58 = vadd.f32 %v956_v26, %v618_v57  ;;  %v1209_v59 = vpop.f32.mrb[26].mxu0  ;;  %1234 = vmatprep.mubr.bf16.mxu1 %v667_v54 }
 0x2d5   :  { %v630_v60 = vadd.f32 %v1209_v59, %v956_v26  ;;  %v621_v61 = vpop.f32.mrb[27].mxu0  ;;  %1235 = vmatmul.mubr.bf16.gmra.mrb[20].mxu1 %v668_v53  ;;  %v659_v63 = vmax.f32 %v627_v56, 0.0 }
 0x2d6   :  { %v622_v62 = vadd.f32 %v956_v26, %v621_v61  ;;  %v657_v1 = vmax.f32 %v619_v58, 0.0 }
 0x2d7   :  { %v660_v0 = vmax.f32 %v630_v60, 0.0 }
 0x2d8   :  { %v658_v2 = vmax.f32 %v622_v62, 0.0 }
 0x2d9   :  { %v670_v3 = vpack.c.bf16 %v660_v0, %v659_v63 }
 0x2da   :  { %v669_v4 = vpack.c.bf16 %v658_v2, %v657_v1  ;;  %v1212_v5 = vpop.f32.mrb[28].mxu0 }
 0x2db   :  { %v643_v6 = vadd.f32 %v1212_v5, %v956_v26  ;;  %v634_v7 = vpop.f32.mrb[29].mxu0 }
 0x2dc   :  { %v635_v8 = vadd.f32 %v956_v26, %v634_v7  ;;  %v1213_v9 = vpop.f32.mrb[30].mxu0  ;;  %1238 = vmatprep.mubr.bf16.mxu1 %v669_v4 }
 0x2dd   :  { %v646_v10 = vadd.f32 %v1213_v9, %v956_v26  ;;  %v637_v11 = vpop.f32.mrb[31].mxu0  ;;  %1239 = vmatmul.mubr.bf16.gmra.mrb[24].mxu1 %v670_v3  ;;  %v663_v13 = vmax.f32 %v643_v6, 0.0 }
 0x2de   :  { %v638_v12 = vadd.f32 %v956_v26, %v637_v11  ;;  %v661_v15 = vmax.f32 %v635_v8, 0.0 }
 0x2df   :  { %v664_v14 = vmax.f32 %v646_v10, 0.0 }
 0x2e0   :  { %v662_v16 = vmax.f32 %v638_v12, 0.0 }
 0x2e1   :  { %v672_v17 = vpack.c.bf16 %v664_v14, %v663_v13 }
 0x2e2   :  { %v671_v18 = vpack.c.bf16 %v662_v16, %v661_v15 }
 0x2e4   :  { %1242 = vmatprep.mubr.bf16.mxu1 %v671_v18 }
 0x2e5   :  { %1243 = vmatmul.mubr.bf16.gmra.mrb[28].mxu1 %v672_v17 }
 0x3a0   :  { %v1232_v19 = vpop.f32.mrb[16].mxu1 }
 0x3a1   :  { %v780_v21 = vpop.f32.mrb[17].mxu1  ;;  %v789_v23 = vadd.f32 %v1232_v19, %v966_v20 }
 0x3a2   :  { %v1233_v22 = vpop.f32.mrb[18].mxu1  ;;  %v781_v27 = vadd.f32 %v966_v20, %v780_v21 }
 0x3a3   :  { %v792_v24 = vadd.f32 %v1233_v22, %v966_v20  ;;  %v783_v25 = vpop.f32.mrb[19].mxu1 }
 0x3a4   :  { %v784_v26 = vadd.f32 %v966_v20, %v783_v25 }
 0x3a5   :  { %v1015_v28 = vpack.c.bf16 %v792_v24, %v789_v23 }
 0x3a6   :  { %v1010_v29 = vpack.c.bf16 %v784_v26, %v781_v27 }
 0x3a7   :  { %1047 = vst [vmem:[%s1411_s3 + $0x8] sm:$0xff] %v1015_v28  }
 0x3a8   :  { %1011 = vst [vmem:[%s1411_s3] sm:$0xff] %v1010_v29   ;;  %v1236_v30 = vpop.f32.mrb[20].mxu1 }
 0x3a9   :  { %v796_v31 = vpop.f32.mrb[21].mxu1  ;;  %v805_v33 = vadd.f32 %v1236_v30, %v966_v20 }
 0x3aa   :  { %v1237_v32 = vpop.f32.mrb[22].mxu1  ;;  %v797_v36 = vadd.f32 %v966_v20, %v796_v31 }
 0x3ab   :  { %v808_v34 = vadd.f32 %v1237_v32, %v966_v20  ;;  %v799_v35 = vpop.f32.mrb[23].mxu1 }
 0x3ac   :  { %v800_v37 = vadd.f32 %v966_v20, %v799_v35 }
 0x3ad   :  { %v1025_v38 = vpack.c.bf16 %v808_v34, %v805_v33 }
 0x3ae   :  { %v1020_v39 = vpack.c.bf16 %v800_v37, %v797_v36 }
 0x3af   :  { %1049 = vst [vmem:[%s1411_s3 + $0x18] sm:$0xff] %v1025_v38  }
 0x3b0   :  { %1048 = vst [vmem:[%s1411_s3 + $0x10] sm:$0xff] %v1020_v39   ;;  %v1240_v40 = vpop.f32.mrb[24].mxu1 }
 0x3b1   :  { %v812_v41 = vpop.f32.mrb[25].mxu1  ;;  %v821_v43 = vadd.f32 %v1240_v40, %v966_v20 }
 0x3b2   :  { %v1241_v42 = vpop.f32.mrb[26].mxu1  ;;  %v813_v46 = vadd.f32 %v966_v20, %v812_v41 }
 0x3b3   :  { %v824_v44 = vadd.f32 %v1241_v42, %v966_v20  ;;  %v815_v45 = vpop.f32.mrb[27].mxu1 }
 0x3b4   :  { %v816_v47 = vadd.f32 %v966_v20, %v815_v45 }
 0x3b5   :  { %v1035_v48 = vpack.c.bf16 %v824_v44, %v821_v43 }
 0x3b6   :  { %v1030_v49 = vpack.c.bf16 %v816_v47, %v813_v46 }
 0x3b7   :  { %1051 = vst [vmem:[%s1411_s3 + $0x28] sm:$0xff] %v1035_v48  }
 0x3b8   :  { %1050 = vst [vmem:[%s1411_s3 + $0x20] sm:$0xff] %v1030_v49   ;;  %v1244_v50 = vpop.f32.mrb[28].mxu1 }
 0x3b9   :  { %v828_v51 = vpop.f32.mrb[29].mxu1  ;;  %v837_v53 = vadd.f32 %v1244_v50, %v966_v20 }
 0x3ba   :  { %v1245_v52 = vpop.f32.mrb[30].mxu1  ;;  %v829_v56 = vadd.f32 %v966_v20, %v828_v51 }
 0x3bb   :  { %v840_v54 = vadd.f32 %v1245_v52, %v966_v20  ;;  %v831_v55 = vpop.f32.mrb[31].mxu1 }
 0x3bc   :  { %v832_v57 = vadd.f32 %v966_v20, %v831_v55 }
 0x3bd   :  { %v1045_v58 = vpack.c.bf16 %v840_v54, %v837_v53 }
 0x3be   :  { %v1040_v59 = vpack.c.bf16 %v832_v57, %v829_v56 }
 0x3bf   :  { %1053 = vst [vmem:[%s1411_s3 + $0x38] sm:$0xff] %v1045_v58  }
 0x3c0   :  { %1052 = vst [vmem:[%s1411_s3 + $0x30] sm:$0xff] %v1040_v59  }
 0x3c1   :  { %927 = vsyncpa [#allocation3], 1 }

</bundles_post_ra>
